<compile_context>
chip_gen: v7x
topology: tpu7x:2x2x1
jax: 0.10.0
libtpu: 0.0.40
codegen_flags: <defaults>
</compile_context>

<pallas_src>
import math
from functools import partial

import jax
import jax.numpy as jnp
from jax.experimental import pallas as pl
from jax.experimental.pallas import tpu as pltpu

GROUP = 8  # batch rows folded into each lane-dense row


def _round_up(x: int, m: int) -> int:
    return (x + m - 1) // m * m


def _ae_kernel(x_ref, p_ref, o_ref, *, w_in, w_h, w_out,
               o_b1, o_w23, o_b23, o_w4, o_b4):
    """Fused AE forward on one tile of GROUP-folded batch rows.

    x_ref : (tile_r, w_in)   activations, GROUP batch rows per folded row
    p_ref : (rows, pw)       bf16 packed block-diagonal parameter block
    o_ref : (tile_r, w_out)  f32 output, GROUP batch rows per folded row
    """
    x = x_ref[...].astype(jnp.bfloat16)

    # Static, 16-row-aligned views into the packed parameter block (zero cost).
    w1  = p_ref[0:w_in, 0:w_h]              # block-diag project weight
    b1  = p_ref[o_b1:o_b1 + 1, 0:w_h]       # folded project bias
    w23 = p_ref[o_w23:o_w23 + w_h, 0:w_h]   # block-diag fused fc @ project_inv
    b23 = p_ref[o_b23:o_b23 + 1, 0:w_h]     # folded fused bias
    w4  = p_ref[o_w4:o_w4 + w_h, 0:w_out]   # block-diag decode weight
    b4  = p_ref[o_b4:o_b4 + 1, 0:w_out]     # folded decode bias

    # project -> ReLU   (bias add + ReLU in the f32 accumulator; v5e-safe)
    h = jnp.dot(x, w1, preferred_element_type=jnp.float32) + b1
    h = jnp.maximum(h, 0.0).astype(jnp.bfloat16)
    # fc + project_inv (folded) -> ReLU
    h = jnp.dot(h, w23, preferred_element_type=jnp.float32) + b23
    h = jnp.maximum(h, 0.0).astype(jnp.bfloat16)
    # decode
    y = jnp.dot(h, w4, preferred_element_type=jnp.float32) + b4

    o_ref[...] = y.astype(o_ref.dtype)      # full 128-lane unmasked stores


def _block_diag(w, g, rstride, cstride):
    r, c = w.shape
    out = jnp.zeros((g * rstride, g * cstride), jnp.float32)
    for k in range(g):
        out = out.at[k * rstride:k * rstride + r,
                     k * cstride:k * cstride + c].set(w)
    return out


def pack_params(params, g=GROUP):
    """Fold fc∘project_inv, build block-diagonal (per-group) weights and pack
    everything into one 16-row-aligned bf16 (rows, pw) block."""
    (w1, b1), (w2, b2), (w3, b3), (w4, b4) = [
        (jnp.asarray(w, jnp.float32), jnp.asarray(b, jnp.float32))
        for w, b in params]
    din, hid = w1.shape
    dout = w4.shape[1]
    hp = _round_up(hid, 16)               # per-group hidden width (g*hp % 128 == 0)

    # No activation between fc and project_inv:
    #   (h @ w2 + b2) @ w3 + b3 == h @ (w2 @ w3) + (b2 @ w3 + b3)
    w23 = w2 @ w3
    b23 = b2 @ w3 + b3

    w_in, w_h, w_out = g * din, g * hp, g * dout
    pw = max(w_h, _round_up(w_out, 128), 128)

    W1  = _block_diag(w1,  g, din, hp)    # (w_in, w_h)
    W23 = _block_diag(w23, g, hp,  hp)    # (w_h,  w_h)
    W4  = _block_diag(w4,  g, hp,  dout)  # (w_h,  w_out)
    b1f  = jnp.tile(jnp.zeros((hp,), jnp.float32).at[:hid].set(b1),  g)
    b23f = jnp.tile(jnp.zeros((hp,), jnp.float32).at[:hid].set(b23), g)
    b4f  = jnp.tile(b4, g)

    o_b1  = _round_up(w_in, 16)           # all offsets multiples of 16 (bf16 packing)
    o_w23 = o_b1 + 16
    o_b23 = o_w23 + w_h
    o_w4  = o_b23 + 16
    o_b4  = o_w4 + w_h
    rows  = o_b4 + 16

    p = jnp.zeros((rows, pw), jnp.float32)
    p = p.at[0:w_in, 0:w_h].set(W1)
    p = p.at[o_b1, 0:w_h].set(b1f)
    p = p.at[o_w23:o_w23 + w_h, 0:w_h].set(W23)
    p = p.at[o_b23, 0:w_h].set(b23f)
    p = p.at[o_w4:o_w4 + w_h, 0:w_out].set(W4)
    p = p.at[o_b4, 0:w_out].set(b4f)

    meta = dict(w_in=w_in, w_h=w_h, w_out=w_out,
                o_b1=o_b1, o_w23=o_w23, o_b23=o_b23, o_w4=o_w4, o_b4=o_b4)
    return p.astype(jnp.bfloat16), meta


def ae_forward(x, params, *, block_b=8192):
    """x: (B, window, input_features) or (B, window*input_features).
    Returns (B, input_features) float32."""
    B = x.shape[0]
    x2d = x.reshape(B, -1)                         # == x.view(B, -1); free
    din = x2d.shape[1]

    (w1, _), _, _, (w4, _) = params
    assert w1.shape[0] == din, (w1.shape, din)
    dout = w4.shape[1]

    p_block, meta = pack_params(params)
    rows, pw = p_block.shape
    w_in, w_out = meta["w_in"], meta["w_out"]

    # Fold GROUP batch rows per lane-dense row.  For B % GROUP == 0 this is a
    # free row-major reshape (no HBM copy); otherwise pad only up to the next
    # multiple of GROUP.
    Bp = _round_up(B, GROUP)
    if Bp != B:
        x2d = jnp.concatenate(
            [x2d, jnp.zeros((Bp - B, din), x2d.dtype)], axis=0)
    R = Bp // GROUP
    x_f = x2d.reshape(R, w_in)

    # Tile sizing: always legal multiples regardless of caller-provided block_b.
    block_b = max(GROUP * 8, _round_up(block_b, GROUP * 8))
    tile_r = min(block_b // GROUP, _round_up(R, 8))
    grid_r = pl.cdiv(R, tile_r)                    # ragged last tile is masked

    kernel = partial(_ae_kernel, **meta)

    out_f = pl.pallas_call(
        kernel,
        grid=(grid_r,),
        in_specs=[
            pl.BlockSpec((tile_r, w_in), lambda i: (i, 0)),   # batch-tiled acts
            pl.BlockSpec((rows, pw), lambda i: (0, 0)),       # params: fetched once
        ],
        out_specs=pl.BlockSpec((tile_r, w_out), lambda i: (i, 0)),
        out_shape=jax.ShapeDtypeStruct((R, w_out), jnp.float32),
        compiler_params=pltpu.CompilerParams(
            dimension_semantics=("parallel",)),
    )(x_f, p_block)

    out = out_f.reshape(Bp, dout)                  # free un-fold
    return out if Bp == B else out[:B]


def init_linear(key, in_features, out_features):
    """torch.nn.Linear-style init; weight returned already transposed to (in, out)."""
    kw, kb = jax.random.split(key)
    bound = 1.0 / math.sqrt(in_features)
    w = jax.random.uniform(kw, (in_features, out_features), jnp.float32,
                           minval=-bound, maxval=bound)
    b = jax.random.uniform(kb, (out_features,), jnp.float32,
                           minval=-bound, maxval=bound)
    return w, b


def init_ae_params(key, input_features, hidden_features=4, window=1):
    k1, k2, k3, k4 = jax.random.split(key, 4)
    project = init_linear(k1, window * input_features, hidden_features)
    fc = init_linear(k2, hidden_features, hidden_features)
    project_inv = init_linear(k3, hidden_features, hidden_features)
    decode = init_linear(k4, hidden_features, input_features)
    return (project, fc, project_inv, decode)


def ae_reference(x, params):
    """Pure-JAX reference of the (unfused) PyTorch forward."""
    (w1, b1), (w2, b2), (w3, b3), (w4, b4) = params
    h = x.reshape(x.shape[0], -1)
    h = jnp.maximum(h @ w1 + b1, 0.0)
    h = h @ w2 + b2
    h = jnp.maximum(h @ w3 + b3, 0.0)
    h = h @ w4 + b4
    return h


if __name__ == "__main__":
    key = jax.random.PRNGKey(0)
    k_params, k_x, k_x2 = jax.random.split(key, 3)

    input_features = 16
    hidden_features = 4
    window = 1

    params = init_ae_params(k_params, input_features, hidden_features, window)

    # Case 1: aligned batch -> single tile, zero-copy fold/unfold, no out slice.
    batch = 64
    x = jax.random.normal(k_x, (batch, window, input_features), jnp.float32)
    out = ae_forward(x, params)
    jax.block_until_ready(out)
    ref = ae_reference(x, params)
    assert out.shape == (batch, input_features), out.shape
    # bf16 weights/activations + the w2@w3 fold reassociate fp math -> small slack.
    err = float(jnp.max(jnp.abs(out - ref)))
    assert jnp.allclose(out, ref, rtol=3e-2, atol=3e-2), err

    # Case 2: ragged batch + multi-step grid (exercises partial last block).
    batch2 = 300
    x2 = jax.random.normal(k_x2, (batch2, window, input_features), jnp.float32)
    out2 = ae_forward(x2, params, block_b=128)
    jax.block_until_ready(out2)
    ref2 = ae_reference(x2, params)
    assert out2.shape == (batch2, input_features), out2.shape
    err2 = float(jnp.max(jnp.abs(out2 - ref2)))
    assert jnp.allclose(out2, ref2, rtol=3e-2, atol=3e-2), err2

    print("KERNEL_OK")
</pallas_src>

<mosaic_0001>
module attributes {stable_mosaic.version = 11 : i64} {
  func.func @_ae_kernel(%arg0: i32, %arg1: memref<8x128xf32, #tpu.memory_space<vmem>>, %arg2: memref<432x128xbf16, #tpu.memory_space<vmem>>, %arg3: memref<8x128xf32, #tpu.memory_space<vmem>>) attributes {dimension_semantics = [#tpu.dimension_semantics<parallel>], iteration_bounds = array<i64: 1>, scalar_prefetch = 0 : i64, scratch_operands = 0 : i64, tpu.core_type = #tpu.core_type<tc>, window_params = [{transform_indices = @transform_0, window_bounds = array<i64: 8, 128>}, {pipeline_mode = #tpu.pipeline_mode<synchronous>, transform_indices = @transform_1, window_bounds = array<i64: 432, 128>}, {transform_indices = @transform_2, window_bounds = array<i64: 8, 128>}]} {
    %c0 = arith.constant 0 : index
    %c0_0 = arith.constant 0 : index
    %0 = vector.load %arg1[%c0, %c0_0] : memref<8x128xf32, #tpu.memory_space<vmem>>, vector<8x128xf32>
    %1 = arith.truncf %0 : vector<8x128xf32> to vector<8x128xbf16>
    %c0_1 = arith.constant 0 : index
    %c0_2 = arith.constant 0 : index
    %2 = vector.load %arg2[%c0_1, %c0_2] : memref<432x128xbf16, #tpu.memory_space<vmem>>, vector<128x128xbf16>
    %c128 = arith.constant 128 : index
    %c0_3 = arith.constant 0 : index
    %3 = vector.load %arg2[%c128, %c0_3] : memref<432x128xbf16, #tpu.memory_space<vmem>>, vector<1x128xbf16>
    %c144 = arith.constant 144 : index
    %c0_4 = arith.constant 0 : index
    %4 = vector.load %arg2[%c144, %c0_4] : memref<432x128xbf16, #tpu.memory_space<vmem>>, vector<128x128xbf16>
    %c272 = arith.constant 272 : index
    %c0_5 = arith.constant 0 : index
    %5 = vector.load %arg2[%c272, %c0_5] : memref<432x128xbf16, #tpu.memory_space<vmem>>, vector<1x128xbf16>
    %c288 = arith.constant 288 : index
    %c0_6 = arith.constant 0 : index
    %6 = vector.load %arg2[%c288, %c0_6] : memref<432x128xbf16, #tpu.memory_space<vmem>>, vector<128x128xbf16>
    %c416 = arith.constant 416 : index
    %c0_7 = arith.constant 0 : index
    %7 = vector.load %arg2[%c416, %c0_7] : memref<432x128xbf16, #tpu.memory_space<vmem>>, vector<1x128xbf16>
    %cst = arith.constant dense<0.000000e+00> : vector<8x128xf32>
    %8 = tpu.matmul %1, %2, %cst {dimension_numbers = #tpu.dot_dimension_numbers<[1], [0], [0], [1], [0, 0, 1, 1], [], []>} : vector<8x128xbf16>, vector<128x128xbf16>, vector<8x128xf32> -> vector<8x128xf32>
    %9 = arith.extf %3 : vector<1x128xbf16> to vector<1x128xf32>
    %10 = vector.broadcast %9 : vector<1x128xf32> to vector<8x128xf32>
    %11 = arith.addf %8, %10 : vector<8x128xf32>
    %cst_8 = arith.constant 0.000000e+00 : f32
    %12 = vector.broadcast %cst_8 : f32 to vector<8x128xf32>
    %13 = arith.maximumf %11, %12 : vector<8x128xf32>
    %14 = arith.truncf %13 : vector<8x128xf32> to vector<8x128xbf16>
    %cst_9 = arith.constant dense<0.000000e+00> : vector<8x128xf32>
    %15 = tpu.matmul %14, %4, %cst_9 {dimension_numbers = #tpu.dot_dimension_numbers<[1], [0], [0], [1], [0, 0, 1, 1], [], []>} : vector<8x128xbf16>, vector<128x128xbf16>, vector<8x128xf32> -> vector<8x128xf32>
    %16 = arith.extf %5 : vector<1x128xbf16> to vector<1x128xf32>
    %17 = vector.broadcast %16 : vector<1x128xf32> to vector<8x128xf32>
    %18 = arith.addf %15, %17 : vector<8x128xf32>
    %cst_10 = arith.constant 0.000000e+00 : f32
    %19 = vector.broadcast %cst_10 : f32 to vector<8x128xf32>
    %20 = arith.maximumf %18, %19 : vector<8x128xf32>
    %21 = arith.truncf %20 : vector<8x128xf32> to vector<8x128xbf16>
    %cst_11 = arith.constant dense<0.000000e+00> : vector<8x128xf32>
    %22 = tpu.matmul %21, %6, %cst_11 {dimension_numbers = #tpu.dot_dimension_numbers<[1], [0], [0], [1], [0, 0, 1, 1], [], []>} : vector<8x128xbf16>, vector<128x128xbf16>, vector<8x128xf32> -> vector<8x128xf32>
    %23 = arith.extf %7 : vector<1x128xbf16> to vector<1x128xf32>
    %24 = vector.broadcast %23 : vector<1x128xf32> to vector<8x128xf32>
    %25 = arith.addf %22, %24 : vector<8x128xf32>
    %c0_12 = arith.constant 0 : index
    %c0_13 = arith.constant 0 : index
    %26 = vector.load %arg3[%c0_12, %c0_13] : memref<8x128xf32, #tpu.memory_space<vmem>>, vector<8x128xf32>
    tpu.vector_store %arg3[%c0_12, %c0_13], %25 {strides = array<i32>} : memref<8x128xf32, #tpu.memory_space<vmem>>, vector<8x128xf32>,
    return
  }
  func.func @transform_0(%arg0: i32) -> (i32, i32) {
    %c0_i32 = arith.constant 0 : i32
    %c0_i32_0 = arith.constant 0 : i32
    return %arg0, %c0_i32 : i32, i32
  }
  func.func @transform_1(%arg0: i32) -> (i32, i32) {
    %c0_i32 = arith.constant 0 : i32
    %c0_i32_0 = arith.constant 0 : i32
    %c0_i32_1 = arith.constant 0 : i32
    return %c0_i32, %c0_i32_0 : i32, i32
  }
  func.func @transform_2(%arg0: i32) -> (i32, i32) {
    %c0_i32 = arith.constant 0 : i32
    %c0_i32_0 = arith.constant 0 : i32
    return %arg0, %c0_i32 : i32, i32
  }
}

</mosaic_0001>

<bundles_post_ra>
// kernel: tpu_custom_call.1
= control target key start
LH: loop header
LB: loop body
LE: loop exit
PB: predicated region body
PF: predicated region fallthrough
CT: control target
= control target key end

     0   :  { %7 = vsyncpa [#allocation3], 0  ;;  %s701_s0 = inlined_call_operand.hbm [shape: f32[8,128], index: 0, kind: input, shape index: {}]   ;;  %s702_s1 = inlined_call_operand.hbm [shape: bf16[432,128], index: 1, kind: input, shape index: {}]   ;;  %s703_s2 = inlined_call_operand.hbm [shape: f32[8,128], index: 2, kind: output, shape index: {}]  }
   0x1   :  { %8 = vsyncpa [#allocation6], 0 }
   0x2   :  { %9 = vsyncpa [#allocation4], 0  ;;  %s606_s9 = smov [#allocation2]   ;;  %s607_s11 = smov [#allocation5]  }
   0x3   :  { %s16_s10 = sshll.u32 %s606_s9, 4  ;;  %s25_s12 = sshll.u32 %s607_s11, 4  ;;  %s17_s10 = int_to_ptr.vmem [resolvable:$true] %s16_s10  ;;  %s628_s12 = int_to_ptr.vmem [resolvable:$true] %s25_s12 }
   0x4   :  { %s534_s15 = scalar_lea.hbm %s701_s0, 128 }
   0x5   :  { %p535_p0 = scmp.ne.s32.totalorder %s701_s0, %s534_s15  ;;  %p538_p1 = scmp.lt.u32.totalorder %s534_s15, %s701_s0 }
   0x7   :  { %p540_p2 = pnand %p538_p1, %p535_p0 }
   0x9   :  { %543 = shalt.err (!%p540_p2)
}
   0xa   :  { %s544_s20 = scalar_lea.vmem %s17_s10, 128  ;;  %p549_p4 = scmp.lt.s32.totalorder %s17_s10, %s17_s10 }
   0xb   :  { %p545_p3 = scmp.ne.s32.totalorder %s17_s10, %s544_s20  ;;  %p550_p5 = scmp.lt.s32.totalorder %s544_s20, %s544_s20 }
   0xd   :  { %p551_p6 = por %p550_p5, %p549_p4 }
   0xf   :  { %p552_p7 = pnand %p551_p6, %p545_p3 }
  0x11   :  { %555 = shalt.err (!%p552_p7)
}
  0x12   :  { %19 = dma.hbm_to_vmem [thread:$0]  %s701_s0, 128, %s17_s10, [#allocation3]  }
  0x13   :  { %s556_s25 = scalar_lea.hbm %s702_s1, 3456 }
  0x14   :  { %p557_p8 = scmp.ne.s32.totalorder %s702_s1, %s556_s25  ;;  %p560_p9 = scmp.lt.u32.totalorder %s556_s25, %s702_s1 }
  0x16   :  { %p562_p10 = pnand %p560_p9, %p557_p8 }
  0x18   :  { %565 = shalt.err (!%p562_p10)
}
  0x19   :  { %s566_s30 = scalar_lea.vmem %s628_s12, 3456  ;;  %p571_p12 = scmp.lt.s32.totalorder %s628_s12, %s628_s12 }
  0x1a   :  { %p567_p11 = scmp.ne.s32.totalorder %s628_s12, %s566_s30  ;;  %p572_p13 = scmp.lt.s32.totalorder %s566_s30, %s566_s30 }
  0x1c   :  { %p573_p0 = por %p572_p13, %p571_p12 }
  0x1e   :  { %p574_p1 = pnand %p573_p0, %p567_p11 }
  0x20   :  { %577 = shalt.err (!%p574_p1)
}
  0x21   :  { %s608_s0 = smov 64   ;;  %s609_s3 = smov 4  }
  0x22   :  { %31 = dma.hbm_to_vmem [thread:$0]  %s702_s1, 3456, %s628_s12, [#allocation6], %s608_s0, %s608_s0, %s609_s3  }
  0x23   :  { %600 = dma.done.wait [#allocation3], 128  }
  0x24   :  { %601 = vsyncadd [#allocation3], 4294967168 }
  0x25   :  { %602 = dma.done.wait [#allocation6], 3456  }
  0x26   :  { %603 = vsyncadd [#allocation6], 4294963840  ;;  %v610_v0 = vmov 0.0   ;;  %vm611_vm0 = vmmov 0   ;;  %v510_v1 = vld [vmem:[#allocation5] sm:$0xff]   ;;  %v511_v2 = vld [vmem:[#allocation5 + $0x8] sm:$0xff]   ;;  %v93_v25 = vlaneseq }
  0x27   :  { %443 = vmatprep.subr.bf16.mxu0 %v610_v0  ;;  %459 = vmatprep.mubr.msk.bf16.mxu0 %vm611_vm0, %v610_v0  ;;  %v512_v3 = vld [vmem:[#allocation5 + $0x10] sm:$0xff]   ;;  %v518_v4 = vld [vmem:[#allocation5 + $0x48] sm:$0xff]   ;;  %v513_v5 = vld [vmem:[#allocation5 + $0x18] sm:$0xff]   ;;  %s612_s1 = smov [#allocation7]  }
  0x28   :  { %463 = vmatprep.subr.bf16.mxu1 %v610_v0  ;;  %479 = vmatprep.mubr.msk.bf16.mxu1 %vm611_vm0, %v610_v0  ;;  %v519_v6 = vld [vmem:[#allocation5 + $0x50] sm:$0xff]   ;;  %v514_v7 = vld [vmem:[#allocation5 + $0x20] sm:$0xff]   ;;  %v520_v8 = vld [vmem:[#allocation5 + $0x58] sm:$0xff]   ;;  %v94_v26 = vshrl.u32 %v93_v25, 7  ;;  %s382_s6 = sshll.u32 %s612_s1, 4  ;;  %s383_s6 = int_to_ptr.vmem [resolvable:$true] %s382_s6 }
  0x29   :  { %444 = vmatpush3.bf16.msra.mxu0 %v510_v1  ;;  %464 = vmatpush3.bf16.msra.mxu1 %v518_v4  ;;  %v515_v9 = vld [vmem:[#allocation5 + $0x28] sm:$0xff]   ;;  %v521_v10 = vld [vmem:[#allocation5 + $0x60] sm:$0xff]   ;;  %v516_v11 = vld [vmem:[#allocation5 + $0x30] sm:$0xff]   ;;  %s578_s7 = scalar_lea.vmem %s383_s6, 128  ;;  %p583_p3 = scmp.lt.s32.totalorder %s383_s6, %s383_s6 }
  0x2a   :  { %445 = vmatprep.subr.bf16.mxu0 %v610_v0  ;;  %465 = vmatprep.subr.bf16.mxu1 %v610_v0  ;;  %v522_v12 = vld [vmem:[#allocation5 + $0x68] sm:$0xff]   ;;  %v517_v13 = vld [vmem:[#allocation5 + $0x38] sm:$0xff]   ;;  %v523_v15 = vld [vmem:[#allocation5 + $0x70] sm:$0xff]   ;;  %v95_v29 = vsub.s32 0, %v94_v26  ;;  %p579_p2 = scmp.ne.s32.totalorder %s383_s6, %s578_s7  ;;  %p584_p4 = scmp.lt.s32.totalorder %s578_s7, %s578_s7 }
  0x2b   :  { %v39_v14 = vld [vmem:[#allocation2] sm:$0xff]  ;;  %v525_v18 = vld [vmem:[#allocation5 + $0x80] sm:$0xff]   ;;  %v526_v19 = vld [vmem:[#allocation5 + $0x90] sm:$0xff]  }
  0x2c   :  { %v40_v16 = vpack.c.bf16 %v39_v14, %v39_v14  ;;  %v524_v17 = vld [vmem:[#allocation5 + $0x78] sm:$0xff]   ;;  %v528_v21 = vld [vmem:[#allocation5 + $0xa0] sm:$0xff]   ;;  %v529_v22 = vld [vmem:[#allocation5 + $0xa8] sm:$0xff]   ;;  %p585_p5 = por %p584_p4, %p583_p3 }
  0x2d   :  { %446 = vmatpush3.bf16.msra.mxu0 %v511_v2  ;;  %466 = vmatpush3.bf16.msra.mxu1 %v519_v6  ;;  %v527_v20 = vld [vmem:[#allocation5 + $0x98] sm:$0xff]   ;;  %v530_v23 = vld [vmem:[#allocation5 + $0xb0] sm:$0xff]   ;;  %v57_v27 = vld [vmem:[#allocation5 + $0x40] sm:$0x1] }
  0x2e   :  { %447 = vmatprep.subr.bf16.mxu0 %v610_v0  ;;  %467 = vmatprep.subr.bf16.mxu1 %v610_v0  ;;  %v531_v24 = vld [vmem:[#allocation5 + $0xb8] sm:$0xff]   ;;  %v92_v28 = vunpack.c.l.bf16 %v57_v27  ;;  %v532_v38 = vld [vmem:[#allocation5 + $0xc0] sm:$0xff]   ;;  %v533_v39 = vld [vmem:[#allocation5 + $0xc8] sm:$0xff]   ;;  %p586_p6 = pnand %p585_p5, %p579_p2 }
  0x2f   :  { %v74_v40 = vld [vmem:[#allocation5 + $0x88] sm:$0x1]  ;;  %v91_v50 = vld [vmem:[#allocation5 + $0xd0] sm:$0x1] }
  0x30   :  { %v96_v30 = vrot.slane %v92_v28, %v95_v29  ;;  %v187_v41 = vunpack.c.l.bf16 %v74_v40  ;;  %v282_v51 = vunpack.c.l.bf16 %v91_v50 }
  0x31   :  { %448 = vmatpush3.bf16.msra.mxu0 %v512_v3  ;;  %468 = vmatpush3.bf16.msra.mxu1 %v520_v8 }
  0x32   :  { %449 = vmatprep.subr.bf16.mxu0 %v610_v0  ;;  %469 = vmatprep.subr.bf16.mxu1 %v610_v0  ;;  %v191_v42 = vrot.slane %v187_v41, %v95_v29  ;;  %v286_v52 = vrot.slane %v282_v51, %v95_v29 }
  0x35   :  { %450 = vmatpush3.bf16.msra.mxu0 %v513_v5  ;;  %470 = vmatpush3.bf16.msra.mxu1 %v521_v10 }
  0x36   :  { %451 = vmatprep.subr.bf16.mxu0 %v610_v0  ;;  %471 = vmatprep.subr.bf16.mxu1 %v610_v0 }
  0x39   :  { %452 = vmatpush3.bf16.msra.mxu0 %v514_v7  ;;  %472 = vmatpush3.bf16.msra.mxu1 %v522_v12 }
  0x3a   :  { %453 = vmatprep.subr.bf16.mxu0 %v610_v0  ;;  %473 = vmatprep.subr.bf16.mxu1 %v610_v0 }
  0x3d   :  { %454 = vmatpush3.bf16.msra.mxu0 %v515_v9  ;;  %474 = vmatpush3.bf16.msra.mxu1 %v523_v15 }
  0x3e   :  { %455 = vmatprep.subr.bf16.mxu0 %v610_v0  ;;  %475 = vmatprep.subr.bf16.mxu1 %v610_v0 }
  0x41   :  { %456 = vmatpush3.bf16.msra.mxu0 %v516_v11  ;;  %476 = vmatpush3.bf16.msra.mxu1 %v524_v17 }
  0x42   :  { %457 = vmatprep.subr.bf16.mxu0 %v610_v0  ;;  %477 = vmatprep.subr.bf16.mxu1 %v610_v0 }
  0x45   :  { %458 = vmatpush3.bf16.msra.mxu0 %v517_v13  ;;  %478 = vmatpush3.bf16.msra.mxu1 %v525_v18 }
  0x46   :  { %483 = vmatprep.subr.bf16.mxu0 %v610_v0 }
  0x48   :  { %460 = vmatmul.mubr.bf16.vlgmr.msra.gmra.mrb[0].mxu0 %v40_v16 }
  0x49   :  { %499 = vmatprep.mubr.msk.bf16.mxu0 %vm611_vm0, %v610_v0  ;;  %484 = vmatpush3.bf16.msra.mxu0 %v526_v19 }
  0x4a   :  { %485 = vmatprep.subr.bf16.mxu0 %v610_v0 }
  0x4d   :  { %486 = vmatpush3.bf16.msra.mxu0 %v527_v20 }
  0x4e   :  { %487 = vmatprep.subr.bf16.mxu0 %v610_v0 }
  0x51   :  { %488 = vmatpush3.bf16.msra.mxu0 %v528_v21 }
  0x52   :  { %489 = vmatprep.subr.bf16.mxu0 %v610_v0 }
  0x55   :  { %490 = vmatpush3.bf16.msra.mxu0 %v529_v22 }
  0x56   :  { %491 = vmatprep.subr.bf16.mxu0 %v610_v0 }
  0x59   :  { %492 = vmatpush3.bf16.msra.mxu0 %v530_v23 }
  0x5a   :  { %493 = vmatprep.subr.bf16.mxu0 %v610_v0 }
  0x5d   :  { %494 = vmatpush3.bf16.msra.mxu0 %v531_v24 }
  0x5e   :  { %495 = vmatprep.subr.bf16.mxu0 %v610_v0 }
  0x61   :  { %496 = vmatpush3.bf16.msra.mxu0 %v532_v38 }
  0x62   :  { %497 = vmatprep.subr.bf16.mxu0 %v610_v0 }
  0x65   :  { %498 = vmatpush3.bf16.msra.mxu0 %v533_v39 }
 0x11b   :  { %v179_v31 = vpop.f32.mrb[0].mxu0 }
 0x11c   :  { %v180_v32 = vadd.f32 %v179_v31, %v96_v30  ;;  %v461_v33 = vpop.f32.mrb[1].mxu0 }
 0x11d   :  { %v182_v34 = vpop.f32.mrb[2].mxu0 }
 0x11e   :  { %v185_v35 = vmax.f32 %v180_v32, 0.0  ;;  %v462_v36 = vpop.f32.mrb[3].mxu0 }
 0x120   :  { %v186_v37 = vpack.c.bf16 %v185_v35, %v185_v35 }
 0x122   :  { %480 = vmatmul.mubr.bf16.vlgmr.msra.gmra.mrb[0].mxu1 %v186_v37 }
 0x1f5   :  { %v274_v43 = vpop.f32.mrb[0].mxu1 }
 0x1f6   :  { %v275_v44 = vadd.f32 %v274_v43, %v191_v42  ;;  %v481_v45 = vpop.f32.mrb[1].mxu1 }
 0x1f7   :  { %v277_v46 = vpop.f32.mrb[2].mxu1 }
 0x1f8   :  { %v280_v47 = vmax.f32 %v275_v44, 0.0  ;;  %v482_v48 = vpop.f32.mrb[3].mxu1 }
 0x1fa   :  { %v281_v49 = vpack.c.bf16 %v280_v47, %v280_v47 }
 0x1fc   :  { %500 = vmatmul.mubr.bf16.vlgmr.msra.gmra.mrb[4].mxu0 %v281_v49 }
 0x2cf   :  { %v369_v53 = vpop.f32.mrb[4].mxu0 }
 0x2d0   :  { %v370_v54 = vadd.f32 %v369_v53, %v286_v52  ;;  %v501_v55 = vpop.f32.mrb[5].mxu0 }
 0x2d1   :  { %v372_v56 = vpop.f32.mrb[6].mxu0 }
 0x2d2   :  { %375 = vst [vmem:[#allocation7] sm:$0xff] %v370_v54  ;;  %v502_v57 = vpop.f32.mrb[7].mxu0 }
 0x2d3   :  { %589 = shalt.err (!%p586_p6)
}
 0x2d4   :  { %s590_s10 = scalar_lea.hbm %s703_s2, 128 }
 0x2d5   :  { %p591_p7 = scmp.ne.s32.totalorder %s703_s2, %s590_s10  ;;  %p594_p8 = scmp.lt.u32.totalorder %s590_s10, %s703_s2 }
 0x2d7   :  { %p596_p9 = pnand %p594_p8, %p591_p7 }
 0x2d9   :  { %599 = shalt.err (!%p596_p9)
}
 0x2da   :  { %385 = dma.vmem_to_hbm [thread:$0]  %s383_s6, 128, %s703_s2, [#allocation4]  }
 0x2db   :  { %604 = dma.done.wait [#allocation4], 128  }
 0x2dc   :  { %605 = vsyncadd [#allocation4], 4294967168 }
 0x2dd   :  { %389 = vsyncpa [#allocation3], 1 }
 0x2de   :  { %390 = vsyncpa [#allocation6], 1 }
 0x2df   :  { %391 = vsyncpa [#allocation4], 1 }

</bundles_post_ra>
